<compile_context>
chip_gen: v7x
topology: tpu7x:2x2x1
jax: 0.10.0
libtpu: 0.0.40
codegen_flags: <defaults>
</compile_context>

<pallas_src>
import functools

import jax
import jax.numpy as jnp
from jax.experimental import pallas as pl
from jax.experimental.pallas import tpu as pltpu

BN_EPS = 1e-5
LANE = 128
VMEM_LIMIT = 48 * 1024 * 1024


def _split_sizes(N, block):
    base = int(N / block)
    sizes = [base] * (block - 1)
    sizes.append(N - sum(sizes))
    return sizes


def _batch_tile(B):
    # Full batch if it fits one 8-sublane tile; otherwise 8 or 16 rows so that
    # cdiv(B, TB) >= 2 (the "parallel" batch axis can shard across both v7x TCs)
    # while the double-buffered bf16 working set stays well under 48 MiB.
    if B <= 8:
        return B
    if B <= 16:
        return 8
    return 16


def _compiler_params():
    return pltpu.CompilerParams(
        dimension_semantics=("parallel",),
        vmem_limit_bytes=VMEM_LIMIT,
    )


# ---------------------------------------------------------------------------
# Kernel 1: heat = mean over hidden dim for ALL tokens (CLS included; the CLS
# column is dropped in the wrapper so no sublane-offset slice happens in VMEM).
# Reads features in bf16, accumulates the mean in f32.
# ---------------------------------------------------------------------------
def _heatmap_kernel(feat_ref, heat_ref):
    heat_ref[...] = jnp.mean(feat_ref[...].astype(jnp.float32), axis=-1)


def heatmap_mean(features):
    B, S, D = features.shape
    TB = _batch_tile(B)
    return pl.pallas_call(
        _heatmap_kernel,
        grid=(pl.cdiv(B, TB),),
        in_specs=[pl.BlockSpec((TB, S, D), lambda b: (b, 0, 0))],
        out_specs=pl.BlockSpec((TB, S), lambda b: (b, 0)),
        out_shape=jax.ShapeDtypeStruct((B, S), jnp.float32),
        compiler_params=_compiler_params(),
    )(features)


# ---------------------------------------------------------------------------
# Kernel 2 (fused): token pooling + all K = block+1 ClassBlocks.
#   cid_ref[b, s]   : 0   -> CLS token (position 0)
#                     k+1 -> patch token assigned to heat-rank chunk k
#   Pooling is a bf16 one-hot batched matmul on the MXU (f32 accumulation);
#   row 0 of the pooled stack is the CLS token, rows 1..block are chunk sums,
#   scaled by 1/size before feeding the (BN-folded, bf16) Linear->Linear chain.
#   Weights use constant index_maps => DMA'd once, resident across batch tiles.
# ---------------------------------------------------------------------------
def _fused_pool_classblock_kernel(cid_ref, feat_ref, w1_ref, b1_ref, w2_ref,
                                  b2_ref, logits_ref, feats_ref, *, block, sizes):
    K = block + 1
    TB, S, _ = feat_ref.shape

    feat = feat_ref[...]                                      # [TB, S, D] bf16
    cid = cid_ref[...]                                        # [TB, S]    int32
    k_iota = jax.lax.broadcasted_iota(jnp.int32, (TB, K, S), 1)
    onehot = (cid[:, None, :] == k_iota).astype(jnp.bfloat16)  # [TB, K, S]

    # One batched MXU matmul does CLS select + all chunk sums at once.
    pooled = jnp.einsum("bks,bsd->bkd", onehot, feat,
                        preferred_element_type=jnp.float32)    # [TB, K, D] f32

    inv = (1.0,) + tuple(1.0 / float(s) for s in sizes)        # row 0 = CLS (size 1)
    for k in range(K):                                         # K is small (block+1)
        x_k = (pooled[:, k, :] * inv[k]).astype(jnp.bfloat16)  # [TB, D]
        y = jnp.dot(x_k, w1_ref[k], preferred_element_type=jnp.float32) + b1_ref[k]
        # nn.Dropout is identity in eval mode; BN already folded into w1/b1.
        feats_ref[k] = y
        logits_ref[k] = (
            jnp.dot(y.astype(jnp.bfloat16), w2_ref[k],
                    preferred_element_type=jnp.float32) + b2_ref[k]
        )


def fused_pool_classblocks(cid_full, features, params, block, sizes):
    B, S, D = features.shape
    K = block + 1
    H = params["w1"].shape[-1]
    Cp = params["w2"].shape[-1]
    TB = _batch_tile(B)

    kern = functools.partial(_fused_pool_classblock_kernel,
                             block=block, sizes=tuple(sizes))

    logits, feats = pl.pallas_call(
        kern,
        grid=(pl.cdiv(B, TB),),
        in_specs=[
            pl.BlockSpec((TB, S), lambda b: (b, 0)),          # chunk ids
            pl.BlockSpec((TB, S, D), lambda b: (b, 0, 0)),    # features (bf16)
            pl.BlockSpec((K, D, H), lambda b: (0, 0, 0)),     # folded w1 (bf16), resident
            pl.BlockSpec((K, 1, H), lambda b: (0, 0, 0)),     # folded b1 (f32), resident
            pl.BlockSpec((K, H, Cp), lambda b: (0, 0, 0)),    # padded w2 (bf16), resident
            pl.BlockSpec((K, 1, Cp), lambda b: (0, 0, 0)),    # padded b2 (f32), resident
        ],
        out_specs=[
            pl.BlockSpec((K, TB, Cp), lambda b: (0, b, 0)),   # lane-dense logits
            pl.BlockSpec((K, TB, H), lambda b: (0, b, 0)),    # bottleneck features
        ],
        out_shape=[
            jax.ShapeDtypeStruct((K, B, Cp), jnp.float32),
            jax.ShapeDtypeStruct((K, B, H), jnp.float32),
        ],
        compiler_params=_compiler_params(),
    )(cid_full, features, params["w1"], params["b1"], params["w2"], params["b2"])
    return logits, feats


# ---------------------------------------------------------------------------
# Forward glue (plain JAX): argsort + scatter of the static rank->chunk vector.
# ---------------------------------------------------------------------------
def fsra_forward(features, params, block):
    """Eval-mode FSRA forward for block >= 2 (the module's stacked-output path)."""
    B, S, D = features.shape
    N = S - 1
    K = block + 1
    sizes = _split_sizes(N, block)

    if features.dtype != jnp.bfloat16:
        features = features.astype(jnp.bfloat16)   # streamed twice; halve HBM bytes

    heat = heatmap_mean(features)[:, 1:]            # Pallas kernel; drop CLS column
    # TODO(synk): per-row sort has no Pallas TPU primitive; argsort stays in JAX.
    # jnp.argsort is stable while torch descending argsort is not guaranteed stable:
    # exact heat ties may assign tokens to different chunks than PyTorch.
    arg = jnp.argsort(-heat, axis=1)                # [B, N] descending-heat order

    # Static rank -> chunk-id vector, scattered with `arg` (no second argsort).
    pos_chunk = []
    for k, s in enumerate(sizes):
        pos_chunk += [k] * s
    pos_chunk = jnp.asarray(pos_chunk, jnp.int32)   # [N]
    rows = jnp.arange(B, dtype=jnp.int32)[:, None]
    chunk_id = jnp.zeros((B, N), jnp.int32).at[rows, arg].set(pos_chunk[None, :])

    # Full-length class ids: CLS position -> 0, patch tokens -> chunk_id + 1.
    cid_full = jnp.concatenate(
        [jnp.zeros((B, 1), jnp.int32), chunk_id + 1], axis=1)        # [B, S]

    logits_p, feats = fused_pool_classblocks(cid_full, features, params, block, sizes)

    C = params["num_classes"]
    logits = logits_p[:, :, :C]                     # drop lane padding
    total_cls = [logits[i] for i in range(K)]
    total_features = jnp.transpose(feats, (1, 2, 0))  # [B, H, block+1]
    return total_cls, total_features


# ---------------------------------------------------------------------------
# Parameters: raw (PyTorch-style) and TPU-prepared (BN folded, bf16, C padded).
# ---------------------------------------------------------------------------
def init_raw_params(key, K, D, H, C):
    ks = jax.random.split(key, 8)
    return dict(
        w1=0.02 * jax.random.normal(ks[0], (K, D, H), jnp.float32),
        b1=0.01 * jax.random.normal(ks[1], (K, 1, H), jnp.float32),
        gamma=1.0 + 0.1 * jax.random.normal(ks[2], (K, 1, H), jnp.float32),
        beta=0.1 * jax.random.normal(ks[3], (K, 1, H), jnp.float32),
        mean=0.05 * jax.random.normal(ks[4], (K, 1, H), jnp.float32),
        var=1.0 + 0.1 * jnp.abs(jax.random.normal(ks[5], (K, 1, H), jnp.float32)),
        w2=0.02 * jax.random.normal(ks[6], (K, H, C), jnp.float32),
        b2=jnp.zeros((K, 1, C), jnp.float32),
    )


def prepare_params(raw):
    """One-time weight transform: fold eval-mode BN into w1/b1, pad C to a
    multiple of 128 with zeros (padded logits columns are exactly zero), cast
    MXU weights to bf16."""
    K, D, H = raw["w1"].shape
    C = raw["w2"].shape[-1]
    scale = raw["gamma"] * jax.lax.rsqrt(raw["var"] + BN_EPS)        # [K,1,H]
    w1f = raw["w1"] * scale
    b1f = (raw["b1"] - raw["mean"]) * scale + raw["beta"]
    Cp = ((C + LANE - 1) // LANE) * LANE
    w2p = jnp.zeros((K, H, Cp), jnp.float32).at[:, :, :C].set(raw["w2"])
    b2p = jnp.zeros((K, 1, Cp), jnp.float32).at[:, :, :C].set(raw["b2"])
    return dict(
        w1=w1f.astype(jnp.bfloat16),
        b1=b1f.astype(jnp.float32),
        w2=w2p.astype(jnp.bfloat16),
        b2=b2p,
        num_classes=C,
    )


# ---------------------------------------------------------------------------
# Pure-JAX f32 reference mirroring the PyTorch forward (eval mode).
# ---------------------------------------------------------------------------
def _classblock_ref(x, raw, i):
    y = x @ raw["w1"][i] + raw["b1"][i, 0]
    y = (y - raw["mean"][i, 0]) / jnp.sqrt(raw["var"][i, 0] + BN_EPS) \
        * raw["gamma"][i, 0] + raw["beta"][i, 0]
    return y @ raw["w2"][i] + raw["b2"][i, 0], y


def ref_forward(features, raw, block):
    gl, gf = _classblock_ref(features[:, 0], raw, 0)
    part = features[:, 1:]
    N = part.shape[1]
    heat = jnp.mean(part, axis=-1)
    arg = jnp.argsort(-heat, axis=1)
    x_sort = jnp.take_along_axis(part, arg[:, :, None], axis=1)
    sizes = _split_sizes(N, block)
    cls_list, feat_list = [gl], [gf]
    start = 0
    for i, s in enumerate(sizes):
        pooled = jnp.mean(x_sort[:, start:start + s], axis=1)
        start += s
        c, f = _classblock_ref(pooled, raw, i + 1)
        cls_list.append(c)
        feat_list.append(f)
    return cls_list, jnp.stack(feat_list, axis=-1)


if __name__ == "__main__":
    B, S, D, H, C, block = 2, 9, 32, 64, 10, 3   # S = 1 CLS token + 8 patch tokens

    key = jax.random.PRNGKey(0)
    kx, kp = jax.random.split(key)
    # Backbone-style bf16 activations (the kernels stream features in bf16).
    features = jax.random.normal(kx, (B, S, D), jnp.float32).astype(jnp.bfloat16)
    raw = init_raw_params(kp, block + 1, D, H, C)
    params = prepare_params(raw)

    cls_list, total_features = fsra_forward(features, params, block)
    jax.block_until_ready(total_features)

    # Reference runs in f32 on the same bf16-rounded inputs.
    ref_cls, ref_features = ref_forward(features.astype(jnp.float32), raw, block)
    # Kernel uses bf16 MXU operands (f32 accumulation); compare against the f32
    # reference with a tolerance covering bf16 rounding.
    for a, b in zip(cls_list, ref_cls):
        assert a.shape == b.shape
        assert jnp.allclose(a, b, atol=5e-3, rtol=5e-2), "logits mismatch"
    assert total_features.shape == (B, H, block + 1)
    assert jnp.allclose(total_features, ref_features, atol=5e-3, rtol=5e-2), \
        "features mismatch"

    print("KERNEL_OK")
</pallas_src>

<mosaic_0001>
module attributes {stable_mosaic.version = 11 : i64} {
  func.func @_heatmap_kernel(%arg0: i32, %arg1: memref<2x9x32xbf16, #tpu.memory_space<vmem>>, %arg2: memref<2x9xf32, #tpu.memory_space<vmem>>) attributes {dimension_semantics = [#tpu.dimension_semantics<parallel>], iteration_bounds = array<i64: 1>, scalar_prefetch = 0 : i64, scratch_operands = 0 : i64, tpu.core_type = #tpu.core_type<tc>, window_params = [{transform_indices = @transform_0, window_bounds = array<i64: 2, 9, 32>}, {transform_indices = @transform_1, window_bounds = array<i64: 2, 9>}]} {
    %c0 = arith.constant 0 : index
    %c0_0 = arith.constant 0 : index
    %c0_1 = arith.constant 0 : index
    %0 = vector.load %arg1[%c0, %c0_0, %c0_1] : memref<2x9x32xbf16, #tpu.memory_space<vmem>>, vector<2x9x32xbf16>
    %1 = arith.extf %0 : vector<2x9x32xbf16> to vector<2x9x32xf32>
    %cst = arith.constant dense<0.000000e+00> : vector<2x9xf32>
    %2 = vector.multi_reduction <add>, %1, %cst [2] : vector<2x9x32xf32> to vector<2x9xf32>
    %cst_2 = arith.constant 3.200000e+01 : f32
    %3 = vector.broadcast %cst_2 : f32 to vector<2x9xf32>
    %4 = arith.divf %2, %3 : vector<2x9xf32>
    %c0_3 = arith.constant 0 : index
    %c0_4 = arith.constant 0 : index
    %5 = vector.load %arg2[%c0_3, %c0_4] : memref<2x9xf32, #tpu.memory_space<vmem>>, vector<2x9xf32>
    tpu.vector_store %arg2[%c0_3, %c0_4], %4 {strides = array<i32>} : memref<2x9xf32, #tpu.memory_space<vmem>>, vector<2x9xf32>,
    return
  }
  func.func @transform_0(%arg0: i32) -> (i32, i32, i32) {
    %c0_i32 = arith.constant 0 : i32
    %c0_i32_0 = arith.constant 0 : i32
    %c0_i32_1 = arith.constant 0 : i32
    return %arg0, %c0_i32, %c0_i32_0 : i32, i32, i32
  }
  func.func @transform_1(%arg0: i32) -> (i32, i32) {
    %c0_i32 = arith.constant 0 : i32
    %c0_i32_0 = arith.constant 0 : i32
    return %arg0, %c0_i32 : i32, i32
  }
}

</mosaic_0001>

<bundles_post_ra>
// kernel: tpu_custom_call.1
= control target key start
LH: loop header
LB: loop body
LE: loop exit
PB: predicated region body
PF: predicated region fallthrough
CT: control target
= control target key end

     0   :  { %vm17_vm0 = vcmask 261120   ;;  %s138_s0 = inlined_call_operand.vmem [shape: bf16[2,9,32], index: 0, kind: input, shape index: {}]   ;;  %s139_s1 = inlined_call_operand.hbm [shape: f32[2,9], index: 1, kind: output, shape index: {}]  }
   0x1   :  { %v11_v0 = vld [vmem:[%s138_s0] ss:$8 sps:$4 sm:$0xff]   ;;  %v12_v1 = vld [vmem:[%s138_s0 + $0xc] sm:$0x1]  ;;  %v10_v5 = vld [vmem:[%s138_s0 + $0x4] sm:$0x1] }
   0x2   :  { %v15_v2 = vunpack.c.h.bf16 %v11_v0  ;;  %v13_v3 = vunpack.c.l.bf16 %v11_v0  ;;  %v16_v4 = vunpack.c.l.bf16 %v12_v1 }
   0x3   :  { %6 = vsyncpa [#allocation3], 0  ;;  %vm21_vm1 = vcmask 253952   ;;  %v14_v6 = vunpack.c.l.bf16 %v10_v5  ;;  %v40_v11 = vlaneseq  ;;  %vm51_vm2 = vcmask 130112   ;;  %s106_s0 = smov [#allocation2]  }
   0x4   :  { %v25_v7 = vsel %vm17_vm0, %v15_v2, 0.0  ;;  %v18_v8 = vsel %vm17_vm0, %v13_v3, 0.0  ;;  %v28_v9 = vsel %vm21_vm1, %v16_v4, 0.0  ;;  %vm62_vm3 = vcmask 1041409   ;;  %s73_s12 = sshll.u32 %s106_s0, 4  ;;  %s74_s12 = int_to_ptr.vmem [resolvable:$true] %s73_s12 }
   0x5   :  { %26 = vadd.xlane.f32.xlu1 %v25_v7  ;;  %19 = vadd.xlane.f32.xlu0 %v18_v8  ;;  %v22_v10 = vsel %vm21_vm1, %v14_v6, 0.0  ;;  %v41_v12 = vand.u32 127, %v40_v11  ;;  %v43_v13 = vshrl.u32 %v40_v11, 7  ;;  %vm65_vm4 = vcmask 66560   ;;  %s82_s13 = scalar_lea.vmem %s74_s12, 32  ;;  %p87_p1 = scmp.lt.s32.totalorder %s74_s12, %s74_s12 }
   0x6   :  { %p83_p0 = scmp.ne.s32.totalorder %s74_s12, %s82_s13  ;;  %p88_p2 = scmp.lt.s32.totalorder %s82_s13, %s82_s13 }
   0x7   :  { %v46_v14 = vadd.s32 4294967288, %v41_v12  ;;  %v44_v17 = vsub.s32 %v41_v12, %v43_v13 }
   0x8   :  { %p89_p3 = por %p88_p2, %p87_p1 }
   0x9   :  { %29 = vadd.xlane.f32.xlu1 %v28_v9  ;;  %23 = vadd.xlane.f32.xlu0 %v22_v10  ;;  %v49_v20 = vsub.s32 %v46_v14, %v43_v13 }
   0xa   :  { %p90_p4 = pnand %p89_p3, %p83_p0 }
  0x92   :  { %v27_v15 = vpop.xlane.xlu1 %26  ;;  %v20_v16 = vpop.xlane.xlu0 %19 }
  0x93   :  { %v34_v18 = vmul.f32 0.03125, %v27_v15  ;;  %v32_v19 = vmul.f32 0.03125, %v20_v16 }
  0x95   :  { %v56_v25 = vrot.slane %v34_v18, %v44_v17  ;;  %v45_v26 = vrot.slane %v32_v19, %v44_v17 }
  0x96   :  { %v30_v21 = vpop.xlane.xlu1 %29  ;;  %v24_v22 = vpop.xlane.xlu0 %23 }
  0x97   :  { %v35_v23 = vmul.f32 0.03125, %v30_v21  ;;  %v33_v24 = vmul.f32 0.03125, %v24_v22 }
  0x99   :  { %v60_v27 = vrot.slane %v35_v23, %v49_v20  ;;  %v50_v28 = vrot.slane %v33_v24, %v49_v20 }
  0x9b   :  { %v52_v29 = vsel %vm51_vm2, %v50_v28, %v45_v26  ;;  %v61_v30 = vsel %vm51_vm2, %v60_v27, %v56_v25 }
  0x9c   :  { %v63_v31 = vsel %vm62_vm3, %v61_v30, %v52_v29 }
  0x9d   :  { %66 = vst.msk [vmem:[#allocation2] sm:$0x3] %vm65_vm4, %v63_v31 }
  0x9e   :  { %93 = shalt.err (!%p90_p4)
}
  0x9f   :  { %s94_s16 = scalar_lea.hbm %s139_s1, 32 }
  0xa0   :  { %p95_p5 = scmp.ne.s32.totalorder %s139_s1, %s94_s16  ;;  %p98_p6 = scmp.lt.u32.totalorder %s94_s16, %s139_s1 }
  0xa2   :  { %p100_p7 = pnand %p98_p6, %p95_p5 }
  0xa4   :  { %103 = shalt.err (!%p100_p7)
}
  0xa5   :  { %76 = dma.vmem_to_hbm [thread:$0]  %s74_s12, 32, %s139_s1, [#allocation3]  }
  0xa6   :  { %104 = dma.done.wait [#allocation3], 32  }
  0xa7   :  { %105 = vsyncadd [#allocation3], 4294967264 }
  0xa8   :  { %80 = vsyncpa [#allocation3], 1 }

</bundles_post_ra>
